<compile_context>
chip_gen: v6e
topology: v6e:2x2x1
jax: 0.10.0
libtpu: 0.0.40
codegen_flags: <defaults>
</compile_context>

<pallas_src>
import jax
import jax.numpy as jnp
from jax.experimental import pallas as pl
from jax.experimental.pallas import tpu as pltpu


def _channel_sum_kernel(x_ref, o_ref):
    """Per-image, per-channel spatial sum.

    x_ref: (1, cin_tile, HW)  one channel-slab of one image (full spatial extent)
    o_ref: (1, cin_tile, 1)   f32 channel sums for this slab
    """
    o_ref[...] = jnp.sum(x_ref[...], axis=-1, keepdims=True, dtype=jnp.float32)


def _pick_cin_tile(cin, hw, itemsize, per_buffer_bytes=6 * 1024 * 1024):
    """Largest channel-slab that (a) keeps the double-buffered block small and
    (b) evenly divides Cin (multiple of 8 when it is a proper tile)."""
    max_tile = max(8, per_buffer_bytes // max(1, hw * itemsize))
    if cin <= max_tile:
        return cin
    t = (max_tile // 8) * 8
    while t >= 8:
        if cin % t == 0:
            return t
        t -= 8
    # TODO(synk): Cin huge and not a multiple of 8 — fall back to an untiled
    # channel axis rather than padding (correctness over VMEM pressure).
    return cin


def image_pool_forward(x, conv_w, bn_gamma, bn_beta, bn_mean, bn_var, eps=1e-5):
    """x: (N, Cin, H, W) NCHW. conv_w: (Cout, Cin, 1, 1). Returns (N, Cout, H, W)."""
    N, Cin, H, W = x.shape
    Cout = conv_w.shape[0]
    HW = H * W

    x3 = x.reshape(N, Cin, HW)                      # free view, no pad copy
    itemsize = jnp.dtype(x.dtype).itemsize
    cin_tile = _pick_cin_tile(Cin, HW, itemsize)
    num_cin_tiles = Cin // cin_tile if Cin % cin_tile == 0 else 1
    if Cin % cin_tile != 0:
        cin_tile = Cin

    cost = pl.CostEstimate(
        flops=N * Cin * HW,                          # the sums; everything else is tiny
        transcendentals=0,
        bytes_accessed=N * Cin * HW * itemsize + N * Cin * 4,
    )

    sums = pl.pallas_call(
        _channel_sum_kernel,
        out_shape=jax.ShapeDtypeStruct((N, Cin, 1), jnp.float32),
        grid=(N, num_cin_tiles),
        in_specs=[pl.BlockSpec((1, cin_tile, HW), lambda n, c: (n, c, 0))],
        out_specs=pl.BlockSpec((1, cin_tile, 1), lambda n, c: (n, c, 0)),
        compiler_params=pltpu.CompilerParams(
            dimension_semantics=("parallel", "parallel"),
            vmem_limit_bytes=32 * 1024 * 1024,
        ),
        cost_estimate=cost,
    )(x3)                                            # (N, Cin, 1) f32 channel sums

    # --- tiny epilogue in XLA: mean divisor + 1x1 conv + BN + ReLU ----------
    scale = bn_gamma.astype(jnp.float32) / jnp.sqrt(bn_var.astype(jnp.float32) + eps)
    w2d = conv_w.reshape(Cout, Cin).astype(jnp.float32)            # (Cout, Cin)
    w_eff = (w2d * scale[:, None]).T * (1.0 / HW)                  # (Cin, Cout); 1/HW folded
    b_eff = bn_beta.astype(jnp.float32) - bn_mean.astype(jnp.float32) * scale  # (Cout,)

    h = sums.reshape(N, Cin) @ w_eff + b_eff[None, :]              # (N, Cout) f32
    h = jnp.maximum(h, 0.0).astype(x.dtype)

    # Bilinear upsample from a 1x1 source is an exact spatial broadcast; done
    # in the wrapper so XLA can fuse it into downstream ops (e.g. ASPP concat).
    return jnp.broadcast_to(h[:, :, None, None], (N, Cout, H, W))


def _reference(x, conv_w, bn_gamma, bn_beta, bn_mean, bn_var, eps=1e-5):
    """Pure-JAX reference mirroring the PyTorch module (eval-mode BN)."""
    N, Cin, H, W = x.shape
    Cout = conv_w.shape[0]
    pooled = jnp.mean(x, axis=(2, 3))                               # (N, Cin)
    h = pooled @ conv_w.reshape(Cout, Cin).T                        # (N, Cout)
    h = (h - bn_mean) / jnp.sqrt(bn_var + eps) * bn_gamma + bn_beta
    h = jnp.maximum(h, 0.0)
    return jnp.broadcast_to(h[:, :, None, None], (N, Cout, H, W))


if __name__ == "__main__":
    key = jax.random.PRNGKey(0)
    k_x, k_w, k_g, k_b, k_m, k_v = jax.random.split(key, 6)

    N, Cin, Cout, H, W = 2, 4, 8, 16, 16

    x = jax.random.normal(k_x, (N, Cin, H, W), dtype=jnp.float32)
    conv_w = jax.random.normal(k_w, (Cout, Cin, 1, 1), dtype=jnp.float32) * 0.1
    bn_gamma = jax.random.uniform(k_g, (Cout,), dtype=jnp.float32, minval=0.5, maxval=1.5)
    bn_beta = jax.random.normal(k_b, (Cout,), dtype=jnp.float32) * 0.1
    bn_mean = jax.random.normal(k_m, (Cout,), dtype=jnp.float32) * 0.1
    bn_var = jax.random.uniform(k_v, (Cout,), dtype=jnp.float32, minval=0.5, maxval=1.5)

    out = image_pool_forward(x, conv_w, bn_gamma, bn_beta, bn_mean, bn_var)
    out = jax.block_until_ready(out)

    ref = _reference(x, conv_w, bn_gamma, bn_beta, bn_mean, bn_var)
    assert out.shape == (N, Cout, H, W)
    assert jnp.allclose(out, ref, atol=1e-3, rtol=1e-3), "mismatch vs reference"

    print("KERNEL_OK")
</pallas_src>

<mosaic_0001>
module attributes {stable_mosaic.version = 11 : i64} {
  func.func @_channel_sum_kernel(%arg0: i32, %arg1: i32, %arg2: memref<1x4x256xf32, #tpu.memory_space<vmem>>, %arg3: memref<1x4x1xf32, #tpu.memory_space<vmem>>) attributes {dimension_semantics = [#tpu.dimension_semantics<parallel>, #tpu.dimension_semantics<parallel>], iteration_bounds = array<i64: 2, 1>, scalar_prefetch = 0 : i64, scratch_operands = 0 : i64, tpu.core_type = #tpu.core_type<tc>, window_params = [{transform_indices = @transform_0, window_bounds = array<i64: 1, 4, 256>}, {transform_indices = @transform_1, window_bounds = array<i64: 1, 4, 1>}]} {
    %c0 = arith.constant 0 : index
    %c0_0 = arith.constant 0 : index
    %c0_1 = arith.constant 0 : index
    %0 = vector.load %arg2[%c0, %c0_0, %c0_1] : memref<1x4x256xf32, #tpu.memory_space<vmem>>, vector<1x4x256xf32>
    %cst = arith.constant dense<0.000000e+00> : vector<1x4xf32>
    %1 = vector.multi_reduction <add>, %0, %cst [2] : vector<1x4x256xf32> to vector<1x4xf32>
    %2 = vector.shape_cast %1 : vector<1x4xf32> to vector<1x4x1xf32>
    %c0_2 = arith.constant 0 : index
    %c0_3 = arith.constant 0 : index
    %c0_4 = arith.constant 0 : index
    %3 = vector.load %arg3[%c0_2, %c0_3, %c0_4] : memref<1x4x1xf32, #tpu.memory_space<vmem>>, vector<1x4x1xf32>
    tpu.vector_store %arg3[%c0_2, %c0_3, %c0_4], %2 {strides = array<i32>} : memref<1x4x1xf32, #tpu.memory_space<vmem>>, vector<1x4x1xf32>,
    return
  }
  func.func @transform_0(%arg0: i32, %arg1: i32) -> (i32, i32, i32) {
    %c0_i32 = arith.constant 0 : i32
    %c0_i32_0 = arith.constant 0 : i32
    return %arg0, %arg1, %c0_i32 : i32, i32, i32
  }
  func.func @transform_1(%arg0: i32, %arg1: i32) -> (i32, i32, i32) {
    %c0_i32 = arith.constant 0 : i32
    %c0_i32_0 = arith.constant 0 : i32
    return %arg0, %arg1, %c0_i32 : i32, i32, i32
  }
}

</mosaic_0001>

<bundles_post_ra>
// kernel: tpu_custom_call.1
= control target key start
LH: loop header
LB: loop body
LE: loop exit
PB: predicated region body
PF: predicated region fallthrough
CT: control target
= control target key end

     0   :  { %6 = vsyncpa [#allocation3], 0  ;;  %s515_s0 = inlined_call_operand.hbm [shape: f32[2,4,256], index: 0, kind: input, shape index: {}]   ;;  %s516_s1 = inlined_call_operand.vmem [shape: f32[2,4,1], index: 1, kind: output, shape index: {}]  }
   0x1   :  { %8 = vsyncpa [#allocation3 + $0x1], 0  ;;  %s415_s6 = smov 0   ;;  %s417_s7 = smov 0  }
   0x2   :  { %s419_s8 = smov 0   ;;  %s421_s9 = smov 0  }
   0x3   :  { %s423_s10 = smov 0   ;;  %s425_s11 = smov 0  }
   0x4 LB: > { %s255_s12 = sadd.s32 4294967295, %s402_s11   ;;  %s26_s13 = sadd.s32 1, %s398_s10  ;;  %s402_s11 = sphi %s425_s11, %s14_s11   ;;  %s398_s10 = sphi %s423_s10, %s524_s10   ;;  %s394_s9 = sphi %s421_s9, %s523_s9   ;;  %s390_s8 = sphi %s419_s8, %s522_s8   ;;  %s386_s7 = sphi %s417_s7, %s521_s7   ;;  %s382_s6 = sphi %s415_s6, %s520_s6  }
   0x5   : > { %p28_p0 = scmp.ge.s32.totalorder %s26_s13, 2  ;;  %s35_s14 = sadd.s32 1, %s390_s8 }
   0x6   : > { %p42_p1 = scmp.ne.s32.totalorder %s390_s8, %s386_s7  ;;  %p43_p2 = scmp.eq.s32.totalorder %s402_s11, 0 }
   0x7   : > { %s526_s13 = smov (%p28_p0, %s26_s13), 0  ;;  %p48_p4 = scmp.ne.s32.totalorder %s386_s7, %s382_s6 }
   0x8   : > { %p451_p3 = por %p43_p2, %p42_p1  ;;  %s30_s16 = ssub.s32 %s398_s10, %s526_s13 }
   0x9   : > { %p49_p5 = scmp.eq.s32.totalorder %s255_s12, 0  ;;  %p33_p6 = scmp.eq.s32.totalorder %s30_s16, 0 }
   0xa   : > { %p274_p8 = scmp.lt.s32.totalorder %s402_s11, 2  ;;  %s100_s19 = sand.u32 1, %s390_s8  }
   0xb   : > { %p458_p7 = por %p49_p5, %p48_p4  ;;  %s267_s20 = sshll.u32 %s398_s10, 7 }
   0xc   : > { %s464_s18 = scalar_select %p33_p6, %s390_s8, %s35_s14  }
   0xd   : > { %s259_s21 = sshll.u32 %s100_s19, 3  ;;  %s112_s24 = scalar_lea.hbm %s515_s0, %s267_s20 }
   0xe   : > { %s104_s25 = scalar_lea.vmem [#allocation2], %s259_s21  ;;  %p473_p9 = pnand %p274_p8, %p451_p3 }
   0xf   : > { %s114_s26 = sshll.u32 %s104_s25, 4  ;;  %p262_p10 = scmp.ge.s32.totalorder %s402_s11, 1  ;;  %s115_s26 = int_to_ptr.vmem [resolvable:$true] %s114_s26 }
  0x10   : > { %p119_p11 = scmp.lt.s32.totalorder %s402_s11, 3  ;;  %s101_s28 = scalar_lea.sflag [#allocation3], %s100_s19 }
  0x11   : > { %p326_p12 = pneg %p473_p9  ;;  %s337_s29 = scalar_lea.vmem %s115_s26, 128 }
  0x12   : > { %p338_p13 = scmp.ne.s32.totalorder %s115_s26, %s337_s29  ;;  %s404_s30 = smov [#allocation2]  }
  0x13   : > { %s342_s2 = sshll.u32 %s404_s30, 4  ;;  %s343_s2 = int_to_ptr.vmem [resolvable:$false] %s342_s2 }
  0x14   : > { %p340_p0 = pnand %p338_p13, %p326_p12  ;;  %s344_s3 = scalar_lea.vmem %s343_s2, 256 }
  0x15   : > { %p345_p2 = scmp.lt.s32.totalorder %s115_s26, %s343_s2  ;;  %p346_p3 = scmp.lt.s32.totalorder %s344_s3, %s337_s29 }
  0x16   : > { %p341_p1 = pneg %p340_p0 }
  0x17   : > { %p347_p4 = por %p346_p3, %p345_p2 }
  0x19   : > { %p348_p5 = pnand %p347_p4, %p341_p1 }
  0x1b   : > { %351 = shalt.err (!%p348_p5)
}
  0x1c   : > { %273 = dma.hbm_to_vmem [thread:$0]  (!%p473_p9), %s112_s24, 128, %s115_s26, %s101_s28  }
  0x1d   : > { %p120_p6 = pnand %p262_p10, %p119_p11 }
  0x1e   : > { %s125_s4 = sand.u32 (!%p120_p6), 1, %s386_s7  }
  0x1f   : > { %123 = sbr.rel (%p120_p6) target bundleno = 182 (0xb6), region = 24  ;;  %s263_s5 = sshll.u32 (!%p120_p6), %s125_s4, 3 }
  0x20   : > { %s126_s6 = scalar_lea.sflag (!%p120_p6), [#allocation3], %s125_s4  ;;  %s129_s12 = scalar_lea.vmem (!%p120_p6), [#allocation2], %s263_s5 }
  0x24   : > { %377 = dma.done.wait (%p458_p7), %s126_s6, 128  }
  0x25   : > { %379 = vsyncadd (%p458_p7), %s126_s6, 4294967168  ;;  %vm161_vm0 = vcmask 1043456   ;;  %v157_v0 = vld [vmem:[%s129_s12] sm:$0xff]  ;;  %p150_p8 = scmp.lt.s32.totalorder %s394_s9, 1  ;;  %vm167_vm1 = vcmask 3072  }
  0x26   : > { %v159_v1 = vcombine.high %v157_v0, %v157_v0  ;;  %v162_v2 = vsel %vm161_vm0, %v157_v0, 0.0 }
  0x27   : > { %s528_s9 = smov (!%p150_p8, %s394_s9), 1 }
  0x28   : > { %v163_v3 = vsel %vm161_vm0, %v159_v1, 0.0  ;;  %s264_s14 = sshll.u32 %s528_s9, 2 }
  0x29   : > { %v164_v4 = vadd.f32 %v163_v3, %v162_v2  ;;  %s156_s19 = scalar_lea.vmem %s516_s1, %s264_s14 }
  0x2b   : > { %165 = vadd.xlane.f32.xlu0 %v164_v4 }
  0xb4   : > { %v166_v5 = vpop.xlane.xlu0 %165 }
  0xb5   : > { %168 = vst.msk [vmem:[%s156_s19] sm:$0xf] %vm167_vm1, %v166_v5 }
  0xb6 PF: > { %s14_s11 = sadd.s32 1, %s402_s11   ;;  %s520_s6 = smov %s386_s7 }
  0xb7   : > { %p11_p7 = scmp.ge.s32.totalorder %s14_s11, 4   ;;  %s521_s7 = smov %s390_s8 }
  0xb8   : > { %s522_s8 = smov %s464_s18  ;;  %s523_s9 = smov %s398_s10 }
  0xb9   : > { %s524_s10 = smov %s526_s13  ;;  %13 = sbr.rel (!%p11_p7) target bundleno = 4 (0x4), region = 64 }
  0xbe   :  { %194 = vsyncpa [#allocation3], 1 }
  0xbf   :  { %196 = vsyncpa [#allocation3 + $0x1], 1 }

</bundles_post_ra>
